<compile_context>
chip_gen: v5e
topology: v5e:2x2
jax: 0.10.0
libtpu: 0.0.40
codegen_flags: <defaults>
</compile_context>

<pallas_src>
import math
import numpy as np
import jax
import jax.numpy as jnp
from jax.experimental import pallas as pl
from jax.experimental.pallas import tpu as pltpu

SAMPLE_RATE = 16000
N_FFT = 1024
WIN_LENGTH = 1024
HOP_LENGTH = 160
N_MELS = 128
N_FREQS = N_FFT // 2 + 1           # 513 (onesided)
F_PAD = 640                        # 513 padded up to a multiple of 128
PAD = (N_FFT - HOP_LENGTH) // 2    # 432 reflect pad on both sides


def _round_up(x, m):
    return ((x + m - 1) // m) * m


# ---------------------------------------------------------------------------
# Deterministic parameter construction (slaney mel filterbank, Hann-windowed
# real-DFT basis).  Pure numpy, no file I/O.
# ---------------------------------------------------------------------------
def _hz_to_mel_slaney(freq):
    freq = np.asarray(freq, dtype=np.float64)
    f_sp = 200.0 / 3.0
    mels = freq / f_sp
    min_log_hz = 1000.0
    min_log_mel = min_log_hz / f_sp
    logstep = math.log(6.4) / 27.0
    safe = np.maximum(freq, 1e-10)
    return np.where(freq >= min_log_hz,
                    min_log_mel + np.log(safe / min_log_hz) / logstep,
                    mels)


def _mel_to_hz_slaney(mels):
    mels = np.asarray(mels, dtype=np.float64)
    f_sp = 200.0 / 3.0
    freqs = f_sp * mels
    min_log_hz = 1000.0
    min_log_mel = min_log_hz / f_sp
    logstep = math.log(6.4) / 27.0
    return np.where(mels >= min_log_mel,
                    min_log_hz * np.exp(logstep * (mels - min_log_mel)),
                    freqs)


def make_mel_filterbank(n_freqs=N_FREQS, f_min=0.0, f_max=SAMPLE_RATE / 2.0,
                        n_mels=N_MELS, sample_rate=SAMPLE_RATE):
    """Slaney-scale, slaney-normalized filterbank, zero-padded to (F_PAD, n_mels)."""
    all_freqs = np.linspace(0.0, sample_rate / 2.0, n_freqs)
    m_min = _hz_to_mel_slaney(f_min)
    m_max = _hz_to_mel_slaney(f_max)
    m_pts = np.linspace(m_min, m_max, n_mels + 2)
    f_pts = _mel_to_hz_slaney(m_pts)                          # (n_mels + 2,)
    f_diff = f_pts[1:] - f_pts[:-1]                           # (n_mels + 1,)
    slopes = f_pts[None, :] - all_freqs[:, None]              # (n_freqs, n_mels + 2)
    down = -slopes[:, :-2] / f_diff[:-1]
    up = slopes[:, 2:] / f_diff[1:]
    fb = np.maximum(0.0, np.minimum(down, up))
    enorm = 2.0 / (f_pts[2:n_mels + 2] - f_pts[:n_mels])      # slaney norm
    fb = fb * enorm[None, :]
    fb_pad = np.zeros((F_PAD, n_mels), dtype=np.float32)      # pad 513 -> 640 rows
    fb_pad[:n_freqs, :] = fb.astype(np.float32)
    return fb_pad                                             # (640, 128) f32


def make_windowed_dft_basis():
    """Hann-windowed real-DFT basis, cos|sin concatenated: (N_FFT, 2*F_PAD) f32.

    Columns [0:513] = windowed cos, [640:1153] = windowed sin, rest zero.
    """
    n = np.arange(N_FFT, dtype=np.float64)
    k = np.arange(N_FREQS, dtype=np.float64)
    # periodic Hann window (torch.hann_window default)
    window = 0.5 - 0.5 * np.cos(2.0 * np.pi * n / N_FFT)
    phase = 2.0 * np.pi * np.outer(n, k) / N_FFT              # (N_FFT, N_FREQS)
    cos_mat = window[:, None] * np.cos(phase)
    sin_mat = window[:, None] * np.sin(phase)
    basis = np.zeros((N_FFT, 2 * F_PAD), dtype=np.float32)
    basis[:, :N_FREQS] = cos_mat.astype(np.float32)
    basis[:, F_PAD:F_PAD + N_FREQS] = sin_mat.astype(np.float32)
    return basis                                              # (1024, 1280) f32


# ---------------------------------------------------------------------------
# Pallas kernel: windowed DFT (one wide bf16 matmul) -> magnitude -> mel -> log
# one grid step handles one (batch, frame-tile) block.
# ---------------------------------------------------------------------------
def _logmel_kernel(frames_ref, basis_ref, fb_ref, out_ref):
    x = frames_ref[...]                                       # (TILE_F, N_FFT) bf16
    # single MXU matmul produces [re | im] side by side, f32 accumulation
    y = jnp.dot(x, basis_ref[...], preferred_element_type=jnp.float32)
    re = y[:, :F_PAD]                                         # (TILE_F, 640)
    im = y[:, F_PAD:]                                         # (TILE_F, 640)
    mag = jnp.sqrt(re * re + im * im)                         # power=1.0 (amplitude)
    mel = jnp.dot(mag, fb_ref[...], preferred_element_type=jnp.float32)  # (TILE_F, 128)
    logmel = jnp.log(jnp.maximum(mel, 1e-5))
    out_ref[...] = logmel.T                                   # (N_MELS, TILE_F), lane-dense


def log_mel_spectrogram(wav, basis_bf16, mel_fb):
    """wav: (B, T) float32 -> (B, N_MELS, n_frames) float32."""
    B, T = wav.shape
    # reflect pad (matches F.pad(..., 'reflect') along the last dim)
    padded = jnp.pad(wav, ((0, 0), (PAD, PAD)), mode="reflect")
    t_padded = T + 2 * PAD
    n_frames = (t_padded - N_FFT) // HOP_LENGTH + 1

    # frame-axis tile: multiple of 128 (lane-dense transposed output), <= 512
    tile_f = min(512, _round_up(n_frames, 128))
    f_pad = _round_up(n_frames, tile_f)
    n_ft = f_pad // tile_f

    # frame (center=False): frames[b, t, :] = padded[b, t*hop : t*hop + n_fft]
    idx = (jnp.arange(n_frames)[:, None] * HOP_LENGTH
           + jnp.arange(N_FFT)[None, :])
    frames = padded[:, idx].astype(jnp.bfloat16)              # (B, n_frames, N_FFT) bf16
    frames = jnp.pad(frames, ((0, 0), (0, f_pad - n_frames), (0, 0)))

    out = pl.pallas_call(
        _logmel_kernel,
        out_shape=jax.ShapeDtypeStruct((B, N_MELS, f_pad), jnp.float32),
        grid=(B, n_ft),
        in_specs=[
            pl.BlockSpec((None, tile_f, N_FFT), lambda b, ft: (b, ft, 0)),
            pl.BlockSpec((N_FFT, 2 * F_PAD), lambda b, ft: (0, 0)),
            pl.BlockSpec((F_PAD, N_MELS), lambda b, ft: (0, 0)),
        ],
        out_specs=pl.BlockSpec((None, N_MELS, tile_f), lambda b, ft: (b, 0, ft)),
        compiler_params=pltpu.CompilerParams(
            dimension_semantics=("parallel", "parallel")),
    )(frames, basis_bf16, mel_fb)

    return out[:, :, :n_frames]                               # (B, n_mels, n_frames)


if __name__ == "__main__":
    key = jax.random.PRNGKey(0)
    B, T = 2, 1600                      # 0.1 s of 16 kHz audio -> 10 frames
    wav = jax.random.normal(key, (B, T), dtype=jnp.float32)

    basis_bf16 = jnp.asarray(make_windowed_dft_basis(), dtype=jnp.bfloat16)  # (1024, 1280)
    mel_fb = jnp.asarray(make_mel_filterbank())                              # (640, 128) f32

    fn = jax.jit(log_mel_spectrogram)
    logmel = fn(wav, basis_bf16, mel_fb)
    jax.block_until_ready(logmel)

    expected_frames = (T + 2 * PAD - N_FFT) // HOP_LENGTH + 1
    assert logmel.shape == (B, N_MELS, expected_frames), logmel.shape
    assert logmel.dtype == jnp.float32
    assert bool(jnp.all(jnp.isfinite(logmel)))
    print("KERNEL_OK")
</pallas_src>

<mosaic_0001>
module attributes {stable_mosaic.version = 11 : i64} {
  func.func @_logmel_kernel(%arg0: i32, %arg1: i32, %arg2: memref<1x128x1024xbf16, #tpu.memory_space<vmem>>, %arg3: memref<1024x1280xbf16, #tpu.memory_space<vmem>>, %arg4: memref<640x128xf32, #tpu.memory_space<vmem>>, %arg5: memref<1x128x128xf32, #tpu.memory_space<vmem>>) attributes {dimension_semantics = [#tpu.dimension_semantics<parallel>, #tpu.dimension_semantics<parallel>], iteration_bounds = array<i64: 2, 1>, scalar_prefetch = 0 : i64, scratch_operands = 0 : i64, tpu.core_type = #tpu.core_type<tc>, window_params = [{transform_indices = @transform_0, window_bounds = array<i64: 1, 128, 1024>}, {pipeline_mode = #tpu.pipeline_mode<synchronous>, transform_indices = @transform_1, window_bounds = array<i64: 1024, 1280>}, {pipeline_mode = #tpu.pipeline_mode<synchronous>, transform_indices = @transform_2, window_bounds = array<i64: 640, 128>}, {transform_indices = @transform_3, window_bounds = array<i64: 1, 128, 128>}]} {
    %c0 = arith.constant 0 : index
    %c0_0 = arith.constant 0 : index
    %c0_1 = arith.constant 0 : index
    %0 = vector.load %arg2[%c0, %c0_0, %c0_1] : memref<1x128x1024xbf16, #tpu.memory_space<vmem>>, vector<1x128x1024xbf16>
    %1 = vector.shape_cast %0 : vector<1x128x1024xbf16> to vector<128x1024xbf16>
    %c0_2 = arith.constant 0 : index
    %c0_3 = arith.constant 0 : index
    %2 = vector.load %arg3[%c0_2, %c0_3] : memref<1024x1280xbf16, #tpu.memory_space<vmem>>, vector<1024x1280xbf16>
    %cst = arith.constant dense<0.000000e+00> : vector<128x1280xf32>
    %3 = tpu.matmul %1, %2, %cst {dimension_numbers = #tpu.dot_dimension_numbers<[1], [0], [0], [1], [0, 0, 1, 1], [], []>} : vector<128x1024xbf16>, vector<1024x1280xbf16>, vector<128x1280xf32> -> vector<128x1280xf32>
    %4 = vector.extract_strided_slice %3 {offsets = [0, 0], sizes = [128, 640], strides = [1, 1]} : vector<128x1280xf32> to vector<128x640xf32>
    %5 = vector.extract_strided_slice %3 {offsets = [0, 640], sizes = [128, 640], strides = [1, 1]} : vector<128x1280xf32> to vector<128x640xf32>
    %6 = arith.mulf %4, %4 : vector<128x640xf32>
    %7 = arith.mulf %5, %5 : vector<128x640xf32>
    %8 = arith.addf %6, %7 : vector<128x640xf32>
    %9 = math.sqrt %8 : vector<128x640xf32>
    %c0_4 = arith.constant 0 : index
    %c0_5 = arith.constant 0 : index
    %10 = vector.load %arg4[%c0_4, %c0_5] : memref<640x128xf32, #tpu.memory_space<vmem>>, vector<640x128xf32>
    %cst_6 = arith.constant dense<0.000000e+00> : vector<128x128xf32>
    %11 = tpu.matmul %9, %10, %cst_6 {dimension_numbers = #tpu.dot_dimension_numbers<[1], [0], [0], [1], [0, 0, 1, 1], [], []>} : vector<128x640xf32>, vector<640x128xf32>, vector<128x128xf32> -> vector<128x128xf32>
    %cst_7 = arith.constant 9.99999974E-6 : f32
    %12 = vector.broadcast %cst_7 : f32 to vector<128x128xf32>
    %13 = arith.maximumf %11, %12 : vector<128x128xf32>
    %14 = math.log %13 : vector<128x128xf32>
    %15 = tpu.transpose %14, [1, 0] : vector<128x128xf32> -> vector<128x128xf32>
    %c0_8 = arith.constant 0 : index
    %c0_9 = arith.constant 0 : index
    %c0_10 = arith.constant 0 : index
    %16 = vector.load %arg5[%c0_8, %c0_9, %c0_10] : memref<1x128x128xf32, #tpu.memory_space<vmem>>, vector<1x128x128xf32>
    %17 = vector.shape_cast %16 : vector<1x128x128xf32> to vector<128x128xf32>
    %18 = vector.shape_cast %15 : vector<128x128xf32> to vector<1x128x128xf32>
    tpu.vector_store %arg5[%c0_8, %c0_9, %c0_10], %18 {strides = array<i32>} : memref<1x128x128xf32, #tpu.memory_space<vmem>>, vector<1x128x128xf32>,
    return
  }
  func.func @transform_0(%arg0: i32, %arg1: i32) -> (i32, i32, i32) {
    %c0_i32 = arith.constant 0 : i32
    %c0_i32_0 = arith.constant 0 : i32
    return %arg0, %arg1, %c0_i32 : i32, i32, i32
  }
  func.func @transform_1(%arg0: i32, %arg1: i32) -> (i32, i32) {
    %c0_i32 = arith.constant 0 : i32
    %c0_i32_0 = arith.constant 0 : i32
    %c0_i32_1 = arith.constant 0 : i32
    return %c0_i32, %c0_i32_0 : i32, i32
  }
  func.func @transform_2(%arg0: i32, %arg1: i32) -> (i32, i32) {
    %c0_i32 = arith.constant 0 : i32
    %c0_i32_0 = arith.constant 0 : i32
    %c0_i32_1 = arith.constant 0 : i32
    return %c0_i32, %c0_i32_0 : i32, i32
  }
  func.func @transform_3(%arg0: i32, %arg1: i32) -> (i32, i32, i32) {
    %c0_i32 = arith.constant 0 : i32
    %c0_i32_0 = arith.constant 0 : i32
    return %arg0, %c0_i32, %arg1 : i32, i32, i32
  }
}

</mosaic_0001>

<bundles_post_ra>
// kernel: reverse.1
= control target key start
LH: loop header
LB: loop body
LE: loop exit
PB: predicated region body
PF: predicated region fallthrough
CT: control target
= control target key end

     0   :  { %v2_v0 = vlaneseq  ;;  %s305_s0 = inlined_call_operand.vmem [shape: bf16[2,512], index: 0, kind: input, shape index: {}]   ;;  %s306_s1 = inlined_call_operand.vmem [shape: bf16[2,512], index: 1, kind: output, shape index: {}]  }
   0x2   :  { %v3_v1 = vsub.s32 127, %v2_v0 }
   0x4   :  { %4 = vset.pattern.permute.xlu0 %v3_v1 }
   0x5   :  { %s265_s6 = smov 0   ;;  %s267_s7 = smov 0  }
   0x6   :  { %s269_s8 = smov 0  }
   0x7 LB: > { %s201_s9 = sadd.s32 4294967295, %s253_s8   ;;  %s19_s10 = sadd.s32 1, %s249_s7  ;;  %s253_s8 = sphi %s269_s8, %s10_s8   ;;  %s249_s7 = sphi %s267_s7, %s308_s7   ;;  %s245_s6 = sphi %s265_s6, %s307_s6  }
   0x8   : > { %p20_p0 = scmp.ge.s32.totalorder %s19_s10, 4  ;;  %p203_p1 = scmp.ge.s32.totalorder %s253_s8, 4 }
   0x9   : > { %s38_s11 = sand.u32 (!%p203_p1), 1, %s253_s8   ;;  %s40_s12 = ssub.s32 (!%p203_p1), 3, %s249_s7 }
   0xa   : > { %s310_s10 = smov (%p20_p0, %s19_s10), 0  ;;  %36 = sbr.rel (%p203_p1) target bundleno = 17 (0x11), region = 16 }
   0xb   : > { %s43_s15 = scalar_lea.vmem (!%p203_p1), %s305_s0, %s40_s12  ;;  %s39_s16 = scalar_lea.vmem (!%p203_p1), [#allocation1], %s38_s11 }
   0xf   : > { %v60_v2 = vld [vmem:[%s43_s15] sm:$0x1] }
  0x10   : > { %61 = vst [vmem:[%s39_s16] sm:$0x1] %v60_v2 }
  0x11 PF: > { %p204_p2 = scmp.ge.s32.totalorder %s253_s8, 1  ;;  %p78_p3 = scmp.lt.s32.totalorder %s253_s8, 5 }
  0x13   : > { %p79_p4 = pnand %p204_p2, %p78_p3 }
  0x14   : > { %s88_s17 = sand.u32 (!%p79_p4), 1, %s201_s9   ;;  %s125_s22 = scalar_lea.vmem (!%p79_p4), %s306_s1, %s245_s6 }
  0x15   : > { %82 = sbr.rel (%p79_p4) target bundleno = 171 (0xab), region = 50  ;;  %s89_s18 = scalar_lea.vmem (!%p79_p4), [#allocation1], %s88_s17 }
  0x16   : > { %s92_s19 = scalar_lea.vmem (!%p79_p4), [#allocation3], %s88_s17 }
  0x1a   : > { %v104_v3 = vld [vmem:[%s89_s18] sm:$0x1] }
  0x1b   : > { %v105_v4 = vunpack.c.l.bf16 %v104_v3 }
  0x1d   : > { %107 = vst [vmem:[#allocation0] sm:$0x3] %v105_v4 }
  0x24   : > { %v109_v5 = vld [vmem:[#allocation0] sm:$0xff] }
  0x25   : > { %110 = vperm.xlu0 %4, %v109_v5  }
  0x97   : > { %v111_v6 = vpop.permute.xlu0 %110 }
  0x98   : > { %112 = vst [vmem:[#allocation2] sm:$0xff] %v111_v6 }
  0x9f   : > { %v115_v7 = vld [vmem:[#allocation2] sm:$0x3] }
  0xa0   : > { %v116_v8 = vpack.c.bf16 0.0, %v115_v7 }
  0xa2   : > { %119 = vst [vmem:[%s92_s19] sm:$0x1] %v116_v8 }
  0xa9   : > { %v142_v9 = vld [vmem:[%s92_s19] sm:$0x1] }
  0xaa   : > { %143 = vst [vmem:[%s125_s22] sm:$0x1] %v142_v9 }
  0xab PF: > { %s10_s8 = sadd.s32 1, %s253_s8   ;;  %s307_s6 = smov %s249_s7 }
  0xac   : > { %p7_p5 = scmp.ge.s32.totalorder %s10_s8, 6   ;;  %s308_s7 = smov %s310_s10 }
  0xae   :  { %9 = sbr.rel (!%p7_p5) target bundleno = 7 (0x7), region = 110 }

</bundles_post_ra>
